<compile_context>
chip_gen: v7x
topology: tpu7x:2x2x1
jax: 0.10.0
libtpu: 0.0.40
codegen_flags: <defaults>
</compile_context>

<pallas_src>
import jax
import jax.numpy as jnp
from jax.experimental import pallas as pl
from jax.experimental.pallas import tpu as pltpu


HIDDEN = 128
CP = 128          # class-padded width for in-VMEM fc2/softmax math
MXU_M = 256       # MXU M width on v6e/v7x (multiple of v5e's 128)


def textnn_kernel(x_ref, w1_ref, b1_ref, w2_ref, b2_ref, out_ref):
    # Whole forward pass for one batch tile lives in VMEM.
    x = x_ref[...]                                            # (TB, IN)

    # fc1 + ReLU (MXU, f32 accumulate)
    h = jnp.dot(x, w1_ref[...], preferred_element_type=jnp.float32)
    h = jnp.maximum(h + b1_ref[...], 0.0)                     # (TB, 128)

    # fc2 against the class-padded weight (lane-dense N=128 MXU matmul).
    logits = jnp.dot(h, w2_ref[...], preferred_element_type=jnp.float32)
    logits = logits + b2_ref[...]                             # (TB, CP)

    # Numerically stable softmax. Padded classes carry a -1e30 bias, so their
    # exp underflows to 0 and the denominator only sums the real classes.
    m = jnp.max(logits, axis=1, keepdims=True)
    e = jnp.exp(logits - m)
    denom = jnp.sum(e, axis=1, keepdims=True)
    inv = pl.reciprocal(denom, approx=False)                  # EUP, frees VPU
    probs = e * inv                                           # (TB, CP)

    # Store only the real classes -> (TB, C) goes to HBM, padding stays in VMEM.
    out_ref[...] = probs[:, : out_ref.shape[1]].astype(out_ref.dtype)


def _round_up(x, m):
    return ((x + m - 1) // m) * m


def _choose_batch_tile(B, IN, C, batch_tile):
    """MXU-aligned, VMEM-budgeted batch tile; >=2 grid steps for large B."""
    if B <= MXU_M:
        tb = _round_up(max(min(batch_tile, B), 8), 8)
    else:
        tb = _round_up(min(batch_tile, B), MXU_M)
        if tb >= B:
            # Split into >=2 grid steps so the "parallel" axis spans both
            # TensorCores on v7x (harmless on single-TC v5e/v6e).
            tb = max(MXU_M, _round_up(pl.cdiv(B, 2), MXU_M))

    # VMEM budget: x + out tiles double-buffered, weights double-buffered too
    # (constant index_map still gets 2 buffers).  Keep well under v7x's 64 MiB.
    weight_bytes = 2 * 4 * (IN * HIDDEN + HIDDEN + HIDDEN * CP + CP)

    def tile_bytes(t):
        return weight_bytes + 2 * 4 * t * (IN + C)

    budget = 40 * 1024 * 1024
    while tb > 8 and tile_bytes(tb) > budget:
        tb = max(8, tb - (MXU_M if tb > MXU_M else 8))
    # TODO(synk): if IN grows so large that the resident w1 alone blows the
    # budget (IN >~ 40k), add a K-reduction grid axis with a VMEM accumulator
    # instead of keeping w1 fully resident (v5e guidance from the review).
    return tb, tile_bytes(tb)


def prepare_params(w1, b1, w2, b2):
    """One-time weight prep (pad fc2 to 128 classes, reshape biases, cast)."""
    H = w1.shape[1]
    C = w2.shape[1]
    NEG = jnp.float32(-1e30)
    w1f = w1.astype(jnp.float32)
    b1_2d = b1.reshape(1, H).astype(jnp.float32)
    w2p = jnp.zeros((H, CP), jnp.float32).at[:, :C].set(w2.astype(jnp.float32))
    b2p = jnp.full((1, CP), NEG, dtype=jnp.float32).at[0, :C].set(
        b2.astype(jnp.float32))
    return {"w1": w1f, "b1": b1_2d, "w2p": w2p, "b2p": b2p, "num_classes": C}


def textnn_forward(x, params, *, batch_tile=512):
    """x: (B, input_size) f32.  params: output of prepare_params."""
    B, IN = x.shape
    H = params["w1"].shape[1]
    C = params["num_classes"]

    tb, needed_bytes = _choose_batch_tile(B, IN, C, batch_tile)
    grid = (pl.cdiv(B, tb),)

    vmem_limit = int(min(48 * 1024 * 1024,
                         max(32 * 1024 * 1024, needed_bytes * 3 // 2)))

    cost = pl.CostEstimate(
        flops=2 * B * IN * H + 2 * B * H * CP,
        transcendentals=B * CP,
        bytes_accessed=4 * (B * IN + IN * H + H + H * CP + CP + B * C),
    )

    out = pl.pallas_call(
        textnn_kernel,
        out_shape=jax.ShapeDtypeStruct((B, C), jnp.float32),
        grid_spec=pltpu.PrefetchScalarGridSpec(
            num_scalar_prefetch=0,
            grid=grid,
            in_specs=[
                pl.BlockSpec((tb, IN), lambda i: (i, 0)),   # x tile (streamed)
                pl.BlockSpec((IN, H), lambda i: (0, 0)),    # w1 (resident)
                pl.BlockSpec((1, H), lambda i: (0, 0)),     # b1 (resident)
                pl.BlockSpec((H, CP), lambda i: (0, 0)),    # w2 padded (resident)
                pl.BlockSpec((1, CP), lambda i: (0, 0)),    # b2 padded (resident)
            ],
            out_specs=pl.BlockSpec((tb, C), lambda i: (i, 0)),
        ),
        compiler_params=pltpu.CompilerParams(
            dimension_semantics=("parallel",),              # megacore on v7x
            vmem_limit_bytes=vmem_limit,
        ),
        cost_estimate=cost,
    )(x.astype(jnp.float32), params["w1"], params["b1"],
      params["w2p"], params["b2p"])

    return out


def init_params(key, input_size, hidden=128, num_classes=2):
    """PyTorch-Linear-style init U(-1/sqrt(fan_in), 1/sqrt(fan_in))."""
    k1, k2, k3, k4 = jax.random.split(key, 4)
    bound1 = 1.0 / jnp.sqrt(jnp.float32(input_size))
    bound2 = 1.0 / jnp.sqrt(jnp.float32(hidden))
    # Stored already transposed: (in_features, out_features)
    w1 = jax.random.uniform(k1, (input_size, hidden), jnp.float32, -bound1, bound1)
    b1 = jax.random.uniform(k2, (hidden,), jnp.float32, -bound1, bound1)
    w2 = jax.random.uniform(k3, (hidden, num_classes), jnp.float32, -bound2, bound2)
    b2 = jax.random.uniform(k4, (num_classes,), jnp.float32, -bound2, bound2)
    return w1, b1, w2, b2


def _reference(x, w1, b1, w2, b2):
    h = jnp.maximum(x @ w1 + b1, 0.0)
    logits = h @ w2 + b2
    return jax.nn.softmax(logits, axis=1)


if __name__ == "__main__":
    key = jax.random.PRNGKey(0)
    kx1, kx2, kp = jax.random.split(key, 3)

    input_size = 32
    num_classes = 2
    w1, b1, w2, b2 = init_params(kp, input_size, hidden=HIDDEN,
                                 num_classes=num_classes)
    params = prepare_params(w1, b1, w2, b2)   # one-time weight prep (hoisted)

    # Case 1: small batch, single grid step (tile rounded up to 8 rows;
    # trailing rows are clipped by Pallas, never written back).
    x1 = jax.random.normal(kx1, (8, input_size), jnp.float32)
    out1 = jax.block_until_ready(textnn_forward(x1, params))
    ref1 = _reference(x1, w1, b1, w2, b2)
    assert out1.shape == (8, num_classes)
    assert jnp.allclose(out1, ref1, atol=1e-5, rtol=1e-4)
    assert jnp.allclose(jnp.sum(out1, axis=1), 1.0, atol=1e-5)

    # Case 2: batch not divisible by the tile -> multi-step parallel grid with
    # a partial final tile (no jnp.pad copy of x).
    x2 = jax.random.normal(kx2, (20, input_size), jnp.float32)
    out2 = jax.block_until_ready(textnn_forward(x2, params, batch_tile=16))
    ref2 = _reference(x2, w1, b1, w2, b2)
    assert out2.shape == (20, num_classes)
    assert jnp.allclose(out2, ref2, atol=1e-5, rtol=1e-4)
    assert jnp.allclose(jnp.sum(out2, axis=1), 1.0, atol=1e-5)

    print("KERNEL_OK")
</pallas_src>

<mosaic_0001>
module attributes {stable_mosaic.version = 11 : i64} {
  func.func @textnn_kernel(%arg0: i32, %arg1: memref<8x32xf32, #tpu.memory_space<vmem>>, %arg2: memref<32x128xf32, #tpu.memory_space<vmem>>, %arg3: memref<1x128xf32, #tpu.memory_space<vmem>>, %arg4: memref<128x128xf32, #tpu.memory_space<vmem>>, %arg5: memref<1x128xf32, #tpu.memory_space<vmem>>, %arg6: memref<8x2xf32, #tpu.memory_space<vmem>>) attributes {dimension_semantics = [#tpu.dimension_semantics<parallel>], iteration_bounds = array<i64: 1>, scalar_prefetch = 0 : i64, scratch_operands = 0 : i64, tpu.core_type = #tpu.core_type<tc>, window_params = [{transform_indices = @transform_0, window_bounds = array<i64: 8, 32>}, {pipeline_mode = #tpu.pipeline_mode<synchronous>, transform_indices = @transform_1, window_bounds = array<i64: 32, 128>}, {pipeline_mode = #tpu.pipeline_mode<synchronous>, transform_indices = @transform_2, window_bounds = array<i64: 1, 128>}, {pipeline_mode = #tpu.pipeline_mode<synchronous>, transform_indices = @transform_3, window_bounds = array<i64: 128, 128>}, {pipeline_mode = #tpu.pipeline_mode<synchronous>, transform_indices = @transform_4, window_bounds = array<i64: 1, 128>}, {transform_indices = @transform_5, window_bounds = array<i64: 8, 2>}]} {
    %c0 = arith.constant 0 : index
    %c0_0 = arith.constant 0 : index
    %0 = vector.load %arg1[%c0, %c0_0] : memref<8x32xf32, #tpu.memory_space<vmem>>, vector<8x32xf32>
    %c0_1 = arith.constant 0 : index
    %c0_2 = arith.constant 0 : index
    %1 = vector.load %arg2[%c0_1, %c0_2] : memref<32x128xf32, #tpu.memory_space<vmem>>, vector<32x128xf32>
    %cst = arith.constant dense<0.000000e+00> : vector<8x128xf32>
    %2 = tpu.matmul %0, %1, %cst {dimension_numbers = #tpu.dot_dimension_numbers<[1], [0], [0], [1], [0, 0, 1, 1], [], []>} : vector<8x32xf32>, vector<32x128xf32>, vector<8x128xf32> -> vector<8x128xf32>
    %c0_3 = arith.constant 0 : index
    %c0_4 = arith.constant 0 : index
    %3 = vector.load %arg3[%c0_3, %c0_4] : memref<1x128xf32, #tpu.memory_space<vmem>>, vector<1x128xf32>
    %4 = vector.broadcast %3 : vector<1x128xf32> to vector<8x128xf32>
    %5 = arith.addf %2, %4 : vector<8x128xf32>
    %cst_5 = arith.constant 0.000000e+00 : f32
    %6 = vector.broadcast %cst_5 : f32 to vector<8x128xf32>
    %7 = arith.maximumf %5, %6 : vector<8x128xf32>
    %c0_6 = arith.constant 0 : index
    %c0_7 = arith.constant 0 : index
    %8 = vector.load %arg4[%c0_6, %c0_7] : memref<128x128xf32, #tpu.memory_space<vmem>>, vector<128x128xf32>
    %cst_8 = arith.constant dense<0.000000e+00> : vector<8x128xf32>
    %9 = tpu.matmul %7, %8, %cst_8 {dimension_numbers = #tpu.dot_dimension_numbers<[1], [0], [0], [1], [0, 0, 1, 1], [], []>} : vector<8x128xf32>, vector<128x128xf32>, vector<8x128xf32> -> vector<8x128xf32>
    %c0_9 = arith.constant 0 : index
    %c0_10 = arith.constant 0 : index
    %10 = vector.load %arg5[%c0_9, %c0_10] : memref<1x128xf32, #tpu.memory_space<vmem>>, vector<1x128xf32>
    %11 = vector.broadcast %10 : vector<1x128xf32> to vector<8x128xf32>
    %12 = arith.addf %9, %11 : vector<8x128xf32>
    %cst_11 = arith.constant dense<0xFF800000> : vector<8xf32>
    %13 = vector.multi_reduction <maximumf>, %12, %cst_11 [1] : vector<8x128xf32> to vector<8xf32>
    %14 = vector.shape_cast %13 : vector<8xf32> to vector<8x1xf32>
    %15 = vector.broadcast %14 : vector<8x1xf32> to vector<8x128xf32>
    %16 = arith.subf %12, %15 : vector<8x128xf32>
    %17 = math.exp %16 : vector<8x128xf32>
    %cst_12 = arith.constant dense<0.000000e+00> : vector<8xf32>
    %18 = vector.multi_reduction <add>, %17, %cst_12 [1] : vector<8x128xf32> to vector<8xf32>
    %19 = vector.shape_cast %18 : vector<8xf32> to vector<8x1xf32>
    %20 = tpu.reciprocal %19 : vector<8x1xf32> -> vector<8x1xf32>
    %21 = vector.broadcast %20 : vector<8x1xf32> to vector<8x128xf32>
    %22 = arith.mulf %17, %21 : vector<8x128xf32>
    %23 = vector.extract_strided_slice %22 {offsets = [0, 0], sizes = [8, 2], strides = [1, 1]} : vector<8x128xf32> to vector<8x2xf32>
    %c0_13 = arith.constant 0 : index
    %c0_14 = arith.constant 0 : index
    %24 = vector.load %arg6[%c0_13, %c0_14] : memref<8x2xf32, #tpu.memory_space<vmem>>, vector<8x2xf32>
    tpu.vector_store %arg6[%c0_13, %c0_14], %23 {strides = array<i32>} : memref<8x2xf32, #tpu.memory_space<vmem>>, vector<8x2xf32>,
    return
  }
  func.func @transform_0(%arg0: i32) -> (i32, i32) {
    %c0_i32 = arith.constant 0 : i32
    %c0_i32_0 = arith.constant 0 : i32
    return %arg0, %c0_i32 : i32, i32
  }
  func.func @transform_1(%arg0: i32) -> (i32, i32) {
    %c0_i32 = arith.constant 0 : i32
    %c0_i32_0 = arith.constant 0 : i32
    %c0_i32_1 = arith.constant 0 : i32
    return %c0_i32, %c0_i32_0 : i32, i32
  }
  func.func @transform_2(%arg0: i32) -> (i32, i32) {
    %c0_i32 = arith.constant 0 : i32
    %c0_i32_0 = arith.constant 0 : i32
    %c0_i32_1 = arith.constant 0 : i32
    return %c0_i32, %c0_i32_0 : i32, i32
  }
  func.func @transform_3(%arg0: i32) -> (i32, i32) {
    %c0_i32 = arith.constant 0 : i32
    %c0_i32_0 = arith.constant 0 : i32
    %c0_i32_1 = arith.constant 0 : i32
    return %c0_i32, %c0_i32_0 : i32, i32
  }
  func.func @transform_4(%arg0: i32) -> (i32, i32) {
    %c0_i32 = arith.constant 0 : i32
    %c0_i32_0 = arith.constant 0 : i32
    %c0_i32_1 = arith.constant 0 : i32
    return %c0_i32, %c0_i32_0 : i32, i32
  }
  func.func @transform_5(%arg0: i32) -> (i32, i32) {
    %c0_i32 = arith.constant 0 : i32
    %c0_i32_0 = arith.constant 0 : i32
    return %arg0, %c0_i32 : i32, i32
  }
}

</mosaic_0001>

<bundles_post_ra>
// kernel: tpu_custom_call.1
= control target key start
LH: loop header
LB: loop body
LE: loop exit
PB: predicated region body
PF: predicated region fallthrough
CT: control target
= control target key end

     0   :  { %10 = vsyncpa [#allocation3], 0  ;;  %s528_s0 = inlined_call_operand.hbm [shape: f32[8,32], index: 0, kind: input, shape index: {}]   ;;  %s529_s1 = inlined_call_operand.hbm [shape: f32[32,128], index: 1, kind: input, shape index: {}]   ;;  %s530_s2 = inlined_call_operand.vmem [shape: f32[1,128], index: 2, kind: input, shape index: {}]   ;;  %s531_s3 = inlined_call_operand.hbm [shape: f32[128,128], index: 3, kind: input, shape index: {}]   ;;  %s532_s4 = inlined_call_operand.vmem [shape: f32[1,128], index: 4, kind: input, shape index: {}]   ;;  %s533_s5 = inlined_call_operand.vmem [shape: f32[8,2], index: 5, kind: output, shape index: {}]  }
   0x1   :  { %11 = vsyncpa [#allocation5], 0  ;;  %s439_s18 = smov [#allocation4]   ;;  %s369_s22 = scalar_lea.hbm %s529_s1, 512 }
   0x2   :  { %s27_s19 = sshll.u32 %s439_s18, 4  ;;  %p370_p0 = scmp.ne.s32.totalorder %s529_s1, %s369_s22  ;;  %s28_s19 = int_to_ptr.vmem [resolvable:$true] %s27_s19 }
   0x3   :  { %p373_p1 = scmp.lt.u32.totalorder %s369_s22, %s529_s1 }
   0x5   :  { %p375_p2 = pnand %p373_p1, %p370_p0 }
   0x7   :  { %378 = shalt.err (!%p375_p2)
}
   0x8   :  { %s379_s27 = scalar_lea.vmem %s28_s19, 512  ;;  %p384_p4 = scmp.lt.s32.totalorder %s28_s19, %s28_s19 }
   0x9   :  { %p380_p3 = scmp.ne.s32.totalorder %s28_s19, %s379_s27  ;;  %p385_p5 = scmp.lt.s32.totalorder %s379_s27, %s379_s27 }
   0xb   :  { %p386_p6 = por %p385_p5, %p384_p4 }
   0xd   :  { %p387_p7 = pnand %p386_p6, %p380_p3 }
   0xf   :  { %390 = shalt.err (!%p387_p7)
}
  0x10   :  { %s440_s28 = smov 128   ;;  %s441_s29 = smov 8  }
  0x11   :  { %33 = dma.hbm_to_vmem [thread:$0]  %s529_s1, 512, %s28_s19, [#allocation5], %s440_s28, %s440_s28, %s441_s29  }
  0x12   :  { %s442_s7 = smov [#allocation2]   ;;  %s443_s9 = smov [#allocation6]  }
  0x13   :  { %s18_s8 = sshll.u32 %s442_s7, 4  ;;  %s41_s10 = sshll.u32 %s443_s9, 4  ;;  %s19_s8 = int_to_ptr.vmem [resolvable:$true] %s18_s8  ;;  %s42_s10 = int_to_ptr.vmem [resolvable:$true] %s41_s10 }
  0x14   :  { %s391_s13 = scalar_lea.hbm %s528_s0, 128 }
  0x15   :  { %p392_p8 = scmp.ne.s32.totalorder %s528_s0, %s391_s13  ;;  %p395_p9 = scmp.lt.u32.totalorder %s391_s13, %s528_s0 }
  0x17   :  { %p397_p10 = pnand %p395_p9, %p392_p8 }
  0x19   :  { %400 = shalt.err (!%p397_p10)
}
  0x1a   :  { %s401_s1 = scalar_lea.vmem %s19_s8, 128  ;;  %p406_p12 = scmp.lt.s32.totalorder %s19_s8, %s19_s8 }
  0x1b   :  { %p402_p11 = scmp.ne.s32.totalorder %s19_s8, %s401_s1  ;;  %p407_p13 = scmp.lt.s32.totalorder %s401_s1, %s401_s1 }
  0x1d   :  { %p408_p0 = por %p407_p13, %p406_p12 }
  0x1f   :  { %p409_p1 = pnand %p408_p0, %p402_p11 }
  0x21   :  { %412 = shalt.err (!%p409_p1)
}
  0x22   :  { %21 = dma.hbm_to_vmem [thread:$0]  %s528_s0, 128, %s19_s8, [#allocation3]  }
  0x23   :  { %s413_s22 = scalar_lea.hbm %s531_s3, 2048 }
  0x24   :  { %p414_p2 = scmp.ne.s32.totalorder %s531_s3, %s413_s22  ;;  %p417_p3 = scmp.lt.u32.totalorder %s413_s22, %s531_s3 }
  0x26   :  { %p419_p4 = pnand %p417_p3, %p414_p2 }
  0x28   :  { %422 = shalt.err (!%p419_p4)
}
  0x29   :  { %s423_s27 = scalar_lea.vmem %s42_s10, 2048  ;;  %p428_p6 = scmp.lt.s32.totalorder %s42_s10, %s42_s10 }
  0x2a   :  { %p424_p5 = scmp.ne.s32.totalorder %s42_s10, %s423_s27  ;;  %p429_p7 = scmp.lt.s32.totalorder %s423_s27, %s423_s27 }
  0x2c   :  { %p430_p8 = por %p429_p7, %p428_p6 }
  0x2e   :  { %p431_p9 = pnand %p430_p8, %p424_p5 }
  0x30   :  { %434 = shalt.err (!%p431_p9)
}
  0x31   :  { %47 = dma.hbm_to_vmem [thread:$0]  %s531_s3, 2048, %s42_s10, [#allocation5], %s440_s28, %s440_s28, %s441_s29  }
  0x32   :  { %435 = dma.done.wait [#allocation3], 128  }
  0x33   :  { %436 = vsyncadd [#allocation3], 4294967168 }
  0x34   :  { %437 = dma.done.wait [#allocation5], 2560  }
  0x35   :  { %438 = vsyncadd [#allocation5], 4294964736  ;;  %v444_v0 = vmov 0.0|0.0   ;;  %vm445_vm0 = vmmov 0   ;;  %v446_v1 = vmov 0.0   ;;  %v60_v2 = vld [vmem:[#allocation4] sm:$0xff] }
  0x36   :  { %327 = vmatprep.subr.bf16.mxu0 %v444_v0  ;;  %289 = vmatprep.mubr.msk.f32.mxu0 %vm445_vm0, %v446_v1  ;;  %v61_v3 = vld [vmem:[#allocation4 + $0x8] sm:$0xff]  ;;  %v62_v4 = vld [vmem:[#allocation4 + $0x10] sm:$0xff]  ;;  %v63_v6 = vld [vmem:[#allocation4 + $0x18] sm:$0xff]  ;;  %vm71_vm1 = vcmask 261120   ;;  %vm248_vm2 = vcmask 15360  }
  0x37   :  { %333 = vmatprep.subr.bf16.mxu1 %v444_v0  ;;  %324 = vmatprep.mubr.msk.f32.mxu1 %vm445_vm0, %v446_v1  ;;  %v328_v5 = vpack.c.bf16 %v61_v3, %v60_v2  ;;  %v146_v7 = vld [vmem:[#allocation6] sm:$0xff]  ;;  %v147_v8 = vld [vmem:[#allocation6 + $0x8] sm:$0xff]  ;;  %v148_v9 = vld [vmem:[#allocation6 + $0x10] sm:$0xff]  ;;  %v331_v11 = vpack.c.bf16 %v63_v6, %v62_v4 }
  0x38   :  { %v149_v10 = vld [vmem:[#allocation6 + $0x18] sm:$0xff]  ;;  %v334_v12 = vpack.c.bf16 %v147_v8, %v146_v7  ;;  %v150_v14 = vld [vmem:[#allocation6 + $0x20] sm:$0xff]  ;;  %v151_v15 = vld [vmem:[#allocation6 + $0x28] sm:$0xff] }
  0x39   :  { %329 = vmatpush3.bf16.msra.mxu0 %v328_v5  ;;  %v337_v13 = vpack.c.bf16 %v149_v10, %v148_v9  ;;  %v59_v16 = vld [vmem:[#allocation2] sm:$0xff]  ;;  %v340_v17 = vpack.c.bf16 %v151_v15, %v150_v14  ;;  %v152_v18 = vld [vmem:[#allocation6 + $0x30] sm:$0xff]  ;;  %v154_v21 = vld [vmem:[#allocation6 + $0x40] sm:$0xff] }
  0x3a   :  { %330 = vmatprep.subr.bf16.mxu0 %v444_v0  ;;  %335 = vmatpush3.bf16.msra.mxu1 %v334_v12  ;;  %v153_v19 = vld [vmem:[#allocation6 + $0x38] sm:$0xff]  ;;  %v155_v22 = vld [vmem:[#allocation6 + $0x48] sm:$0xff]  ;;  %v156_v24 = vld [vmem:[#allocation6 + $0x50] sm:$0xff] }
  0x3b   :  { %336 = vmatprep.subr.bf16.mxu1 %v444_v0  ;;  %v343_v20 = vpack.c.bf16 %v153_v19, %v152_v18  ;;  %v346_v23 = vpack.c.bf16 %v155_v22, %v154_v21  ;;  %v157_v25 = vld [vmem:[#allocation6 + $0x58] sm:$0xff]  ;;  %v158_v27 = vld [vmem:[#allocation6 + $0x60] sm:$0xff]  ;;  %v159_v28 = vld [vmem:[#allocation6 + $0x68] sm:$0xff] }
  0x3c   :  { %v349_v26 = vpack.c.bf16 %v157_v25, %v156_v24  ;;  %v352_v29 = vpack.c.bf16 %v159_v28, %v158_v27  ;;  %v160_v30 = vld [vmem:[#allocation6 + $0x70] sm:$0xff]  ;;  %v161_v31 = vld [vmem:[#allocation6 + $0x78] sm:$0xff] }
  0x3d   :  { %332 = vmatpush3.bf16.msra.mxu0 %v331_v11  ;;  %v355_v32 = vpack.c.bf16 %v161_v31, %v160_v30  ;;  %v256_v33 = vld [vmem:[%s530_s2] ss:$0 sm:$0xff] }
  0x3e   :  { %338 = vmatpush3.bf16.msra.mxu1 %v337_v13  ;;  %v258_v38 = vld [vmem:[%s532_s4] ss:$0 sm:$0xff] }
  0x3f   :  { %339 = vmatprep.subr.bf16.mxu1 %v444_v0 }
  0x40   :  { %290 = vmatmul.mubr.msk.f32.vlgmr.msra.gmra.mrb[0].mxu0 %vm71_vm1, %v59_v16 }
  0x42   :  { %341 = vmatpush3.bf16.msra.mxu1 %v340_v17 }
  0x43   :  { %342 = vmatprep.subr.bf16.mxu1 %v444_v0 }
  0x46   :  { %344 = vmatpush3.bf16.msra.mxu1 %v343_v20 }
  0x47   :  { %345 = vmatprep.subr.bf16.mxu1 %v444_v0 }
  0x4a   :  { %347 = vmatpush3.bf16.msra.mxu1 %v346_v23 }
  0x4b   :  { %348 = vmatprep.subr.bf16.mxu1 %v444_v0 }
  0x4e   :  { %350 = vmatpush3.bf16.msra.mxu1 %v349_v26 }
  0x4f   :  { %351 = vmatprep.subr.bf16.mxu1 %v444_v0 }
  0x52   :  { %353 = vmatpush3.bf16.msra.mxu1 %v352_v29 }
  0x53   :  { %354 = vmatprep.subr.bf16.mxu1 %v444_v0 }
  0x56   :  { %356 = vmatpush3.bf16.msra.mxu1 %v355_v32 }
 0x113   :  { %v141_v34 = vpop.f32.mrb[0].mxu0 }
 0x114   :  { %v142_v35 = vadd.f32 %v256_v33, %v141_v34  ;;  %v291_v36 = vpop.f32.mrb[1].mxu0 }
 0x116   :  { %v145_v37 = vmax.f32 %v142_v35, 0.0 }
 0x118   :  { %325 = vmatmul.mubr.f32.vlgmr.msra.gmra.mrb[0].mxu1 %v145_v37 }
 0x1eb   :  { %v235_v39 = vpop.f32.mrb[0].mxu1 }
 0x1ec   :  { %v236_v40 = vadd.f32 %v258_v38, %v235_v39  ;;  %v326_v41 = vpop.f32.mrb[1].mxu1 }
 0x1ee   :  { %239 = vmax.xlane.f32.xlu0 %v236_v40 }
 0x27b   :  { %v240_v42 = vpop.xlane.xlu0 %239 }
 0x27c   :  { %v241_v43 = vsub.f32 %v236_v40, %v240_v42 }
 0x27e   :  { %v242_v44 = vmul.f32 1.442695, %v241_v43 }
 0x280   :  { %365 = vpow2.f32 %v242_v44 }
 0x28a   :  { %v366_v45 = vpop.eup %365 }
 0x28b   :  { %244 = vadd.xlane.f32.xlu0 %v366_v45 }
 0x318   :  { %v245_v46 = vpop.xlane.xlu0 %244 }
 0x319   :  { %367 = vrcp.f32 %v245_v46 }
 0x323   :  { %v368_v47 = vpop.eup %367 }
 0x324   :  { %v247_v48 = vmul.f32 %v368_v47, %v366_v45 }
 0x326   :  { %249 = vst.msk [vmem:[%s533_s5] sm:$0xff] %vm248_vm2, %v247_v48 }
 0x327   :  { %254 = vsyncpa [#allocation3], 1 }
 0x328   :  { %255 = vsyncpa [#allocation5], 1 }

</bundles_post_ra>
